<compile_context>
chip_gen: v5e
topology: v5e:2x2
jax: 0.10.0
libtpu: 0.0.40
codegen_flags: <defaults>
</compile_context>

<pallas_src>
import functools

import numpy as np

import jax
import jax.numpy as jnp
from jax.experimental import pallas as pl
from jax.experimental.pallas import tpu as pltpu


_LANE = 512          # lane-dense slab width (multiple of 128)
_BLOCK_ROWS = 256    # (256, 512) f32 tile = 512 KiB per buffer
_NEG_SENTINEL = -1.0e30


def _ohem_kernel(p_ref, t_ref, neg_loss_ref, partial_ref):
    """Elementwise BCE + masking + per-block partial reductions.

    Outputs (per grid step):
      neg_loss_ref : (block_rows, LANE) negative-class BCE; sentinel where t != 0
      partial_ref  : (1, 3, 128) = (sum_pos, count_pos, count_neg) broadcast on lanes
    """
    p = p_ref[...]                                  # (block_rows, LANE) f32
    t = t_ref[...].astype(jnp.int32)                # int8 labels widened for compares

    is_pos = t == 1
    is_neg = t == 0

    # torch.nn.BCELoss clamps each log term at -100.
    log_p = jnp.maximum(jnp.log(p), -100.0)
    log_1mp = jnp.maximum(jnp.log(1.0 - p), -100.0)

    # Per-element negative-class loss; positives / padding get a large negative
    # sentinel so top_k never selects them.
    neg_loss_ref[...] = jnp.where(is_neg, -log_1mp, _NEG_SENTINEL)

    sum_pos = jnp.sum(jnp.where(is_pos, -log_p, 0.0))
    cnt_pos = jnp.sum(is_pos.astype(jnp.float32))   # exact: block has < 2^24 elems
    cnt_neg = jnp.sum(is_neg.astype(jnp.float32))

    # Pack the three per-block scalars into the (1, 3, 128) partials tile with a
    # single full-block store (values broadcast across the lane axis).
    row = jax.lax.broadcasted_iota(jnp.int32, (1, 3, 128), 1)
    partial_ref[...] = jnp.where(row == 0, sum_pos,
                                 jnp.where(row == 1, cnt_pos, cnt_neg))


@functools.partial(jax.jit, static_argnames=("thresh",))
def ohem_neg_loss(denselabel_p, denselabel_t, thresh=0.3):
    p_flat = denselabel_p.reshape(-1).astype(jnp.float32)
    t_f = denselabel_t.reshape(-1).astype(jnp.float32)
    n = p_flat.shape[0]

    # Encode labels as int8: 1 = positive (t == 1), 0 = negative (t == 0),
    # -1 = anything else / padding (ignored). Preserves the exact "== 1 / == 0"
    # semantics of the PyTorch module while shrinking the label stream 4x.
    t_code = jnp.where(t_f == 1.0, jnp.int8(1),
                       jnp.where(t_f == 0.0, jnp.int8(0), jnp.int8(-1)))

    elems_per_block = _BLOCK_ROWS * _LANE
    if n >= elems_per_block:
        block_rows = _BLOCK_ROWS
        total = ((n + elems_per_block - 1) // elems_per_block) * elems_per_block
    else:
        # Small input: single block; rows padded to int8's (32, 128) min tile.
        min_chunk = 32 * _LANE
        total = ((n + min_chunk - 1) // min_chunk) * min_chunk
        block_rows = total // _LANE

    pad = total - n
    if pad:
        p_flat = jnp.pad(p_flat, (0, pad), constant_values=0.5)
        t_code = jnp.pad(t_code, (0, pad), constant_values=-1)

    rows = total // _LANE
    num_blocks = rows // block_rows
    p2 = p_flat.reshape(rows, _LANE)
    t2 = t_code.reshape(rows, _LANE)

    neg_loss, partials = pl.pallas_call(
        _ohem_kernel,
        grid=(num_blocks,),
        in_specs=[
            pl.BlockSpec((block_rows, _LANE), lambda i: (i, 0)),
            pl.BlockSpec((block_rows, _LANE), lambda i: (i, 0)),
        ],
        out_specs=(
            pl.BlockSpec((block_rows, _LANE), lambda i: (i, 0)),
            pl.BlockSpec((1, 3, 128), lambda i: (i, 0, 0)),
        ),
        out_shape=(
            jax.ShapeDtypeStruct((rows, _LANE), jnp.float32),
            jax.ShapeDtypeStruct((num_blocks, 3, 128), jnp.float32),
        ),
        compiler_params=pltpu.CompilerParams(
            dimension_semantics=("parallel",),
            vmem_limit_bytes=32 * 1024 * 1024,
        ),
        cost_estimate=pl.CostEstimate(
            flops=8 * total,
            transcendentals=2 * total,
            bytes_accessed=(4 + 1 + 4) * total + num_blocks * 3 * 128 * 4,
        ),
    )(p2, t2)

    sum_pos = jnp.sum(partials[:, 0, 0])
    # Per-block counts are exact small integers in f32; sum across blocks in int32
    # so counts stay exact beyond 2^24 total elements.
    cnt_pos = jnp.sum(partials[:, 1, 0].astype(jnp.int32))
    cnt_neg = jnp.sum(partials[:, 2, 0].astype(jnp.int32))

    # number_neg = int(thresh * num_neg), with thresh as float32 like the module.
    number_neg = jnp.floor(
        jnp.float32(thresh) * cnt_neg.astype(jnp.float32)).astype(jnp.int32)

    # Static upper bound on number_neg (cnt_neg <= n); small slack covers float32
    # rounding of the runtime product.
    k_max = int(float(np.float32(thresh)) * n * (1.0 + 1e-6)) + 2
    k_max = max(1, min(k_max, total))

    # TODO(synk): the descending-sort / hardest-negative selection has no clean
    # Pallas TPU primitive; done with lax.top_k on the kernel's per-element output.
    topk_vals = jax.lax.top_k(neg_loss.reshape(-1), k_max)[0]
    idx = jnp.arange(k_max, dtype=jnp.int32)
    sum_neg = jnp.sum(jnp.where(idx < number_neg, topk_vals, 0.0))

    nan = jnp.float32(jnp.nan)
    mean_pos = jnp.where(cnt_pos > 0,
                         sum_pos / jnp.maximum(cnt_pos, 1).astype(jnp.float32),
                         nan)  # torch.mean over empty tensor -> nan
    mean_neg = jnp.where(number_neg > 0,
                         sum_neg / jnp.maximum(number_neg, 1).astype(jnp.float32),
                         nan)
    return mean_pos + mean_neg


if __name__ == "__main__":
    key = jax.random.PRNGKey(0)
    k1, k2 = jax.random.split(key)

    # Shapes consistent with a dense-label segmentation head: (N, C, H, W)
    shape = (2, 4, 16, 16)
    # Predictions: probabilities in (0, 1) (post-sigmoid), as BCELoss expects.
    denselabel_p = jax.nn.sigmoid(jax.random.normal(k1, shape, dtype=jnp.float32))
    # Targets: hard 0/1 labels.
    denselabel_t = (jax.random.uniform(k2, shape) < 0.35).astype(jnp.float32)

    loss = ohem_neg_loss(denselabel_p, denselabel_t, thresh=0.3)
    jax.block_until_ready(loss)

    # Pure-JAX reference for a sanity check.
    def ref(p, t, thresh=0.3):
        p = p.reshape(-1)
        t = t.reshape(-1)
        log_p = jnp.maximum(jnp.log(p), -100.0)
        log_1mp = jnp.maximum(jnp.log(1.0 - p), -100.0)
        pos = -log_p[t == 1.0]
        neg = jnp.sort(-log_1mp[t == 0.0])[::-1]
        k = int(thresh * neg.shape[0])
        return jnp.mean(pos) + jnp.mean(neg[:k])

    expected = ref(denselabel_p, denselabel_t)
    assert jnp.allclose(loss, expected, rtol=1e-5, atol=1e-5), (loss, expected)
    print("KERNEL_OK")
</pallas_src>

<mosaic_0001>
module attributes {stable_mosaic.version = 11 : i64} {
  func.func @_ohem_kernel(%arg0: i32, %arg1: memref<32x512xf32, #tpu.memory_space<vmem>>, %arg2: memref<32x512xi8, #tpu.memory_space<vmem>>, %arg3: memref<32x512xf32, #tpu.memory_space<vmem>>, %arg4: memref<1x3x128xf32, #tpu.memory_space<vmem>>) attributes {dimension_semantics = [#tpu.dimension_semantics<parallel>], iteration_bounds = array<i64: 1>, scalar_prefetch = 0 : i64, scratch_operands = 0 : i64, tpu.core_type = #tpu.core_type<tc>, window_params = [{transform_indices = @transform_0, window_bounds = array<i64: 32, 512>}, {transform_indices = @transform_1, window_bounds = array<i64: 32, 512>}, {transform_indices = @transform_2, window_bounds = array<i64: 32, 512>}, {transform_indices = @transform_3, window_bounds = array<i64: 1, 3, 128>}]} {
    %c0 = arith.constant 0 : index
    %c0_0 = arith.constant 0 : index
    %0 = vector.load %arg1[%c0, %c0_0] : memref<32x512xf32, #tpu.memory_space<vmem>>, vector<32x512xf32>
    %c0_1 = arith.constant 0 : index
    %c0_2 = arith.constant 0 : index
    %1 = vector.load %arg2[%c0_1, %c0_2] : memref<32x512xi8, #tpu.memory_space<vmem>>, vector<32x512xi8>
    %2 = arith.extsi %1 : vector<32x512xi8> to vector<32x512xi32>
    %c1_i32 = arith.constant 1 : i32
    %3 = vector.broadcast %c1_i32 : i32 to vector<32x512xi32>
    %4 = arith.cmpi eq, %2, %3 : vector<32x512xi32>
    %c0_i32 = arith.constant 0 : i32
    %5 = vector.broadcast %c0_i32 : i32 to vector<32x512xi32>
    %6 = arith.cmpi eq, %2, %5 : vector<32x512xi32>
    %7 = math.log %0 : vector<32x512xf32>
    %cst = arith.constant -1.000000e+02 : f32
    %8 = vector.broadcast %cst : f32 to vector<32x512xf32>
    %9 = arith.maximumf %7, %8 : vector<32x512xf32>
    %cst_3 = arith.constant 1.000000e+00 : f32
    %10 = vector.broadcast %cst_3 : f32 to vector<32x512xf32>
    %11 = arith.subf %10, %0 : vector<32x512xf32>
    %12 = math.log %11 : vector<32x512xf32>
    %cst_4 = arith.constant -1.000000e+02 : f32
    %13 = vector.broadcast %cst_4 : f32 to vector<32x512xf32>
    %14 = arith.maximumf %12, %13 : vector<32x512xf32>
    %cst_5 = arith.constant 0.000000e+00 : f32
    %15 = vector.broadcast %cst_5 : f32 to vector<32x512xf32>
    %16 = arith.subf %15, %14 : vector<32x512xf32>
    %cst_6 = arith.constant -1.000000e+30 : f32
    %17 = vector.broadcast %cst_6 : f32 to vector<32x512xf32>
    %18 = arith.select %6, %16, %17 : vector<32x512xi1>, vector<32x512xf32>
    %c0_7 = arith.constant 0 : index
    %c0_8 = arith.constant 0 : index
    %19 = vector.load %arg3[%c0_7, %c0_8] : memref<32x512xf32, #tpu.memory_space<vmem>>, vector<32x512xf32>
    tpu.vector_store %arg3[%c0_7, %c0_8], %18 {strides = array<i32>} : memref<32x512xf32, #tpu.memory_space<vmem>>, vector<32x512xf32>,
    %cst_9 = arith.constant 0.000000e+00 : f32
    %20 = vector.broadcast %cst_9 : f32 to vector<32x512xf32>
    %21 = arith.subf %20, %9 : vector<32x512xf32>
    %cst_10 = arith.constant 0.000000e+00 : f32
    %22 = vector.broadcast %cst_10 : f32 to vector<32x512xf32>
    %23 = arith.select %4, %21, %22 : vector<32x512xi1>, vector<32x512xf32>
    %24 = vector.shape_cast %23 : vector<32x512xf32> to vector<1x32x512xf32>
    %cst_11 = arith.constant dense<0.000000e+00> : vector<1xf32>
    %25 = vector.multi_reduction <add>, %24, %cst_11 [1, 2] : vector<1x32x512xf32> to vector<1xf32>
    %26 = vector.shape_cast %25 : vector<1xf32> to vector<1x1x1xf32>
    %27 = vector.extract %26[0, 0, 0] : f32 from vector<1x1x1xf32>
    %28 = arith.extui %4 : vector<32x512xi1> to vector<32x512xi32>
    %29 = arith.sitofp %28 : vector<32x512xi32> to vector<32x512xf32>
    %30 = vector.shape_cast %29 : vector<32x512xf32> to vector<1x32x512xf32>
    %cst_12 = arith.constant dense<0.000000e+00> : vector<1xf32>
    %31 = vector.multi_reduction <add>, %30, %cst_12 [1, 2] : vector<1x32x512xf32> to vector<1xf32>
    %32 = vector.shape_cast %31 : vector<1xf32> to vector<1x1x1xf32>
    %33 = vector.extract %32[0, 0, 0] : f32 from vector<1x1x1xf32>
    %34 = arith.extui %6 : vector<32x512xi1> to vector<32x512xi32>
    %35 = arith.sitofp %34 : vector<32x512xi32> to vector<32x512xf32>
    %36 = vector.shape_cast %35 : vector<32x512xf32> to vector<1x32x512xf32>
    %cst_13 = arith.constant dense<0.000000e+00> : vector<1xf32>
    %37 = vector.multi_reduction <add>, %36, %cst_13 [1, 2] : vector<1x32x512xf32> to vector<1xf32>
    %38 = vector.shape_cast %37 : vector<1xf32> to vector<1x1x1xf32>
    %39 = vector.extract %38[0, 0, 0] : f32 from vector<1x1x1xf32>
    %40 = tpu.iota {dimensions = array<i32: 1>} : vector<1x3x128xi32>
    %c0_i32_14 = arith.constant 0 : i32
    %41 = vector.broadcast %c0_i32_14 : i32 to vector<1x3x128xi32>
    %42 = arith.cmpi eq, %40, %41 : vector<1x3x128xi32>
    %c1_i32_15 = arith.constant 1 : i32
    %43 = vector.broadcast %c1_i32_15 : i32 to vector<1x3x128xi32>
    %44 = arith.cmpi eq, %40, %43 : vector<1x3x128xi32>
    %45 = vector.broadcast %33 : f32 to vector<1x3x128xf32>
    %46 = vector.broadcast %39 : f32 to vector<1x3x128xf32>
    %47 = arith.select %44, %45, %46 : vector<1x3x128xi1>, vector<1x3x128xf32>
    %48 = vector.broadcast %27 : f32 to vector<1x3x128xf32>
    %49 = arith.select %42, %48, %47 : vector<1x3x128xi1>, vector<1x3x128xf32>
    %c0_16 = arith.constant 0 : index
    %c0_17 = arith.constant 0 : index
    %c0_18 = arith.constant 0 : index
    %50 = vector.load %arg4[%c0_16, %c0_17, %c0_18] : memref<1x3x128xf32, #tpu.memory_space<vmem>>, vector<1x3x128xf32>
    tpu.vector_store %arg4[%c0_16, %c0_17, %c0_18], %49 {strides = array<i32>} : memref<1x3x128xf32, #tpu.memory_space<vmem>>, vector<1x3x128xf32>,
    return
  }
  func.func @transform_0(%arg0: i32) -> (i32, i32) {
    %c0_i32 = arith.constant 0 : i32
    %c0_i32_0 = arith.constant 0 : i32
    return %arg0, %c0_i32 : i32, i32
  }
  func.func @transform_1(%arg0: i32) -> (i32, i32) {
    %c0_i32 = arith.constant 0 : i32
    %c0_i32_0 = arith.constant 0 : i32
    return %arg0, %c0_i32 : i32, i32
  }
  func.func @transform_2(%arg0: i32) -> (i32, i32) {
    %c0_i32 = arith.constant 0 : i32
    %c0_i32_0 = arith.constant 0 : i32
    return %arg0, %c0_i32 : i32, i32
  }
  func.func @transform_3(%arg0: i32) -> (i32, i32, i32) {
    %c0_i32 = arith.constant 0 : i32
    %c0_i32_0 = arith.constant 0 : i32
    %c0_i32_1 = arith.constant 0 : i32
    return %arg0, %c0_i32, %c0_i32_0 : i32, i32, i32
  }
}

</mosaic_0001>

<bundles_post_ra>
// kernel: ohem_neg_loss.1
= control target key start
LH: loop header
LB: loop body
LE: loop exit
PB: predicated region body
PF: predicated region fallthrough
CT: control target
= control target key end

     0   :  { %v1281_v53 = vmov 0  ;;  %v1283_v54 = vmov 0  ;;  %v1286_v57 = vmov 0  ;;  %v1288_v58 = vmov 0  ;;  %s1242_s0 = inlined_call_operand.vmem [shape: f32[32,512], index: 0, kind: input, shape index: {}]   ;;  %s1243_s1 = inlined_call_operand.vmem [shape: s8[32,512], index: 1, kind: input, shape index: {}]   ;;  %s1244_s2 = inlined_call_operand.vmem [shape: f32[32,512], index: 2, kind: output, shape index: {0}]   ;;  %s1245_s3 = inlined_call_operand.vmem [shape: f32[1,3,128], index: 3, kind: output, shape index: {1}]  }
   0x1   :  { %v554_v0 = vld [vmem:[%s1242_s0] sm:$0xff]  ;;  %v559_v1 = vld [vmem:[%s1242_s0 + $0x8] sm:$0xff]  ;;  %v564_v2 = vld [vmem:[%s1242_s0 + $0x10] sm:$0xff] }
   0x2   :  { %v569_v3 = vld [vmem:[%s1242_s0 + $0x18] sm:$0xff]  ;;  %466 = vlog2.f32 %v554_v0  ;;  %v575_v4 = vld [vmem:[%s1242_s0 + $0x20] sm:$0xff]  ;;  %v584_v5 = vld [vmem:[%s1242_s0 + $0x28] sm:$0xff]  ;;  %v129_v12 = vsub.f32 1.0, %v554_v0  ;;  %v130_v13 = vsub.f32 1.0, %v559_v1  ;;  %v131_v14 = vsub.f32 1.0, %v564_v2 }
   0x3   :  { %468 = vlog2.f32 %v559_v1  ;;  %v589_v6 = vld [vmem:[%s1243_s1] sm:$0xff]  ;;  %v594_v7 = vld [vmem:[%s1243_s1 + $0x8] sm:$0xff]  ;;  %v599_v9 = vld [vmem:[%s1242_s0 + $0x30] sm:$0xff]  ;;  %v132_v18 = vsub.f32 1.0, %v569_v3  ;;  %v133_v19 = vsub.f32 1.0, %v575_v4  ;;  %v134_v20 = vsub.f32 1.0, %v584_v5 }
   0x4   :  { %470 = vlog2.f32 %v564_v2  ;;  %v604_v10 = vld [vmem:[%s1243_s1 + $0x10] sm:$0xff]  ;;  %v609_v11 = vld [vmem:[%s1243_s1 + $0x18] sm:$0xff]  ;;  %v622_v17 = vld [vmem:[%s1242_s0 + $0x40] sm:$0xff]  ;;  %v135_v21 = vsub.f32 1.0, %v599_v9  ;;  %v33_v23 = vunpack.c.0.s8 %v589_v6  ;;  %v34_v24 = vunpack.c.0.s8 %v594_v7 }
   0x5   :  { %472 = vlog2.f32 %v569_v3  ;;  %v617_v16 = vld [vmem:[%s1242_s0 + $0x38] sm:$0xff]  ;;  %1275 = vst [vmem:[#allocation2_spill] sm:$0xff] %v622_v17  ;;  %v35_v28 = vunpack.c.0.s8 %v604_v10  ;;  %v36_v29 = vunpack.c.0.s8 %v609_v11  ;;  %v37_v30 = vunpack.c.1.s8 %v589_v6  ;;  %v648_v44 = vld [vmem:[%s1242_s0 + $0x48] sm:$0xff]  ;;  %v655_v48 = vld [vmem:[%s1242_s0 + $0x50] sm:$0xff] }
   0x6   :  { %474 = vlog2.f32 %v575_v4  ;;  %v136_v25 = vsub.f32 1.0, %v617_v16  ;;  %v38_v31 = vunpack.c.1.s8 %v594_v7  ;;  %v39_v33 = vunpack.c.1.s8 %v604_v10  ;;  %1276 = vst [vmem:[#allocation3_spill] sm:$0xff] %v648_v44  ;;  %v668_v52 = vld [vmem:[%s1242_s0 + $0x58] sm:$0xff]  ;;  %v686_v56 = vld [vmem:[%s1242_s0 + $0x60] sm:$0xff]  ;;  %v704_v60 = vld [vmem:[%s1242_s0 + $0x68] sm:$0xff] }
   0x7   :  { %v40_v34 = vunpack.c.1.s8 %v609_v11  ;;  %v1256_v35 = vunpack.c.2.s8 %v589_v6  ;;  %v1251_v36 = vunpack.c.2.s8 %v594_v7  ;;  %v1250_v37 = vunpack.c.2.s8 %v604_v10  ;;  %1277 = vst [vmem:[#allocation4_spill] sm:$0xff] %v655_v48 }
   0x8   :  { %v467_v8 = vpop.eup %466  ;;  %v1255_v38 = vunpack.c.2.s8 %v609_v11  ;;  %476 = vlog2.f32 %v584_v5  ;;  %vm660_vm0 = vcmp.eq.s32.totalorder %v33_v23, 1  ;;  %1280 = vst [vmem:[#allocation5_spill] sm:$0xff] %v668_v52  ;;  %vm672_vm1 = vcmp.eq.s32.totalorder %v34_v24, 1 }
   0x9   :  { %v469_v15 = vpop.eup %468  ;;  %v82_v41 = vmul.f32 0.6931472, %v467_v8  ;;  %478 = vlog2.f32 %v599_v9  ;;  %v1282_v53 = vsel %vm672_vm1, 4294967295, %v1281_v53  ;;  %vm678_vm2 = vcmp.eq.s32.totalorder %v35_v28, 1  ;;  %1285 = vst [vmem:[#allocation6_spill] sm:$0xff] %v686_v56 }
   0xa   :  { %v471_v22 = vpop.eup %470  ;;  %v84_v42 = vmul.f32 0.6931472, %v469_v15  ;;  %480 = vlog2.f32 %v617_v16  ;;  %v1284_v54 = vsel %vm678_vm2, 4294967295, %v1283_v54  ;;  %vm690_vm3 = vcmp.eq.s32.totalorder %v36_v29, 1  ;;  %1290 = vst [vmem:[#allocation7_spill] sm:$0xff] %v704_v60  ;;  %v711_v15 = vld [vmem:[%s1242_s0 + $0x70] sm:$0xff] }
   0xb   :  { %v473_v27 = vpop.eup %472  ;;  %v86_v43 = vmul.f32 0.6931472, %v471_v22  ;;  %v113_v51 = vmax.f32 %v82_v41, -100.0  ;;  %482 = vlog2.f32 %v622_v17  ;;  %v1287_v57 = vsel %vm690_vm3, 4294967295, %v1286_v57  ;;  %1291 = vst [vmem:[#allocation8_spill] sm:$0xff] %v711_v15 }
   0xc   :  { %v475_v32 = vpop.eup %474  ;;  %v88_v46 = vmul.f32 0.6931472, %v473_v27  ;;  %v114_v55 = vmax.f32 %v84_v42, -100.0  ;;  %vm696_vm4 = vcmp.eq.s32.totalorder %v37_v30, 1  ;;  %484 = vlog2.f32 %v648_v44  ;;  %v721_v42 = vld [vmem:[%s1242_s0 + $0x78] sm:$0xff] }
   0xd   :  { %v90_v47 = vmul.f32 0.6931472, %v475_v32  ;;  %v1289_v58 = vsel %vm696_vm4, 4294967295, %v1288_v58  ;;  %v115_v59 = vmax.f32 %v86_v43, -100.0  ;;  %486 = vlog2.f32 %v655_v48  ;;  %1292 = vst [vmem:[#allocation9_spill] sm:$0xff] %v721_v42 }
   0xe   :  { %v116_v61 = vmax.f32 %v88_v46, -100.0  ;;  %v477_v8 = vpop.eup %476  ;;  %488 = vlog2.f32 %v668_v52  ;;  %v716_v32 = vsub.f32 0.0, %v113_v51  ;;  %vm764_vm5 = vcmp.eq.s32.totalorder %v38_v31, 1 }
   0xf   :  { %v117_v62 = vmax.f32 %v90_v47, -100.0  ;;  %v479_v41 = vpop.eup %478  ;;  %490 = vlog2.f32 %v686_v56  ;;  %v726_v47 = vsub.f32 0.0, %v114_v55  ;;  %v92_v22 = vmul.f32 0.6931472, %v477_v8 }
  0x10   :  { %v481_v63 = vpop.eup %480  ;;  %492 = vlog2.f32 %v704_v60  ;;  %v730_v27 = vsub.f32 0.0, %v115_v59  ;;  %v94_v49 = vmul.f32 0.6931472, %v479_v41  ;;  %v734_v40 = vsub.f32 0.0, %v116_v61 }
  0x11   :  { %v483_v26 = vpop.eup %482  ;;  %494 = vlog2.f32 %v711_v15  ;;  %v96_v46 = vmul.f32 0.6931472, %v481_v63  ;;  %v737_v55 = vsub.f32 0.0, %v117_v62  ;;  %v118_v45 = vmax.f32 %v92_v22, -100.0 }
  0x12   :  { %v485_v43 = vpop.eup %484  ;;  %496 = vlog2.f32 %v721_v42  ;;  %v98_v51 = vmul.f32 0.6931472, %v483_v26  ;;  %vm770_vm6 = vcmp.eq.s32.totalorder %v33_v23, 0  ;;  %vm778_vm7 = vcmp.eq.s32.totalorder %v34_v24, 0 }
  0x13   :  { %v487_v59 = vpop.eup %486  ;;  %v100_v39 = vmul.f32 0.6931472, %v485_v43  ;;  %498 = vlog2.f32 %v129_v12  ;;  %v119_v43 = vmax.f32 %v94_v49, -100.0  ;;  %v120_v22 = vmax.f32 %v96_v46, -100.0 }
  0x14   :  { %v489_v41 = vpop.eup %488  ;;  %v102_v63 = vmul.f32 0.6931472, %v487_v59  ;;  %500 = vlog2.f32 %v130_v13  ;;  %v121_v3 = vmax.f32 %v98_v51, -100.0  ;;  %v784_v23 = vsub.f32 0.0, %v118_v45 }
  0x15   :  { %v491_v8 = vpop.eup %490  ;;  %v104_v26 = vmul.f32 0.6931472, %v489_v41  ;;  %502 = vlog2.f32 %v131_v14  ;;  %vm788_vm8 = vcmp.eq.s32.totalorder %v39_v33, 1  ;;  %vm794_vm9 = vcmp.eq.s32.totalorder %v35_v28, 0 }
  0x16   :  { %v493_v12 = vpop.eup %492  ;;  %v106_v59 = vmul.f32 0.6931472, %v491_v8  ;;  %504 = vlog2.f32 %v132_v18  ;;  %v122_v18 = vmax.f32 %v100_v39, -100.0  ;;  %v123_v41 = vmax.f32 %v102_v63, -100.0 }
  0x17   :  { %v495_v13 = vpop.eup %494  ;;  %v108_v49 = vmul.f32 0.6931472, %v493_v12  ;;  %506 = vlog2.f32 %v133_v19  ;;  %v124_v1 = vmax.f32 %v104_v26, -100.0  ;;  %v802_v5 = vsub.f32 0.0, %v119_v43 }
  0x18   :  { %v497_v46 = vpop.eup %496  ;;  %508 = vlog2.f32 %v134_v20  ;;  %v798_v24 = vmul.f32 0.6931472, %v495_v13  ;;  %v125_v39 = vmax.f32 %v106_v59, -100.0  ;;  %vm806_vm10 = vcmp.eq.s32.totalorder %v40_v34, 1 }
  0x19   :  { %v499_v12 = vpop.eup %498  ;;  %510 = vlog2.f32 %v135_v21  ;;  %vm812_vm11 = vcmp.eq.s32.totalorder %v1256_v35, 1  ;;  %v1305_v28 = vmov 0  ;;  %vm818_vm12 = vcmp.eq.s32.totalorder %v36_v29, 0 }
  0x1a   :  { %v501_v20 = vpop.eup %500  ;;  %v1306_v28 = vsel %vm812_vm11, 4294967295, %v1305_v28  ;;  %v822_v21 = vmul.f32 0.6931472, %v497_v46  ;;  %v146_v51 = vmul.f32 0.6931472, %v499_v12  ;;  %512 = vlog2.f32 %v136_v25 }
  0x1b   :  { %v826_v63 = vsub.f32 0.0, %v120_v22  ;;  %v503_v26 = vpop.eup %502  ;;  %vm830_vm13 = vcmp.eq.s32.totalorder %v1251_v36, 1  ;;  %v1309_v43 = vmov 0  ;;  %vm836_vm14 = vcmp.eq.s32.totalorder %v37_v30, 0 }
  0x1c   :  { %v1310_v43 = vsel %vm830_vm13, 4294967295, %v1309_v43  ;;  %v126_v59 = vmax.f32 %v108_v49, -100.0  ;;  %v148_v13 = vmul.f32 0.6931472, %v501_v20  ;;  %v840_v46 = vsub.f32 0.0, %v121_v3  ;;  %v505_v25 = vpop.eup %504 }
  0x1d   :  { %v842_v16 = vsub.f32 0.0, %v122_v18  ;;  %vm846_vm15 = vcmp.eq.s32.totalorder %v1250_v37, 1  ;;  %v1313_v22 = vmov 0  ;;  %vm852_vm4 = vcmp.eq.s32.totalorder %v38_v31, 0  ;;  %v507_v18 = vpop.eup %506 }
  0x1e   :  { %v1314_v22 = vsel %vm846_vm15, 4294967295, %v1313_v22  ;;  %v1315_v30 = vmov 0  ;;  %v150_v12 = vmul.f32 0.6931472, %v503_v26  ;;  %v177_v49 = vmax.f32 %v146_v51, -100.0  ;;  %v509_v35 = vpop.eup %508 }
  0x1f   :  { %v1316_v30 = vsel %vm852_vm4, 4294967295, %v1315_v30  ;;  %v856_v20 = vsub.f32 0.0, %v123_v41  ;;  %v858_v3 = vsub.f32 0.0, %v124_v1  ;;  %vm862_vm3 = vcmp.eq.s32.totalorder %v1255_v38, 1  ;;  %v511_v61 = vpop.eup %510 }
  0x20   :  { %v1317_v37 = vmov 0  ;;  %v1319_v36 = vunpack.c.3.s8 %v589_v6  ;;  %v1320_v31 = vmov 0  ;;  %vm874_vm15 = vcmp.eq.s32.totalorder %v39_v33, 0 }
  0x21   :  { %v1318_v37 = vsel %vm862_vm3, 4294967295, %v1317_v37  ;;  %v127_v1 = vmax.f32 %v798_v24, -100.0  ;;  %v152_v51 = vmul.f32 0.6931472, %v505_v25  ;;  %v178_v26 = vmax.f32 %v148_v13, -100.0 }
  0x22   :  { %vm868_vm2 = vcmp.eq.s32.totalorder %v1319_v36, 1  ;;  %v879_v38 = vsub.f32 0.0, %v125_v39  ;;  %v1324_v0 = vunpack.c.3.s8 %v594_v7  ;;  %v1325_v36 = vmov 0 }
  0x23   :  { %v1321_v31 = vsel %vm868_vm2, 4294967295, %v1320_v31  ;;  %v1327_v62 = vunpack.c.3.s8 %v604_v10  ;;  %vm895_vm1 = vcmp.eq.s32.totalorder %v40_v34, 0  ;;  %v1330_v24 = vmov 0  ;;  %v513_v34 = vpop.eup %512 }
  0x24   :  { %vm883_vm3 = vcmp.eq.s32.totalorder %v1324_v0, 1  ;;  %v1331_v24 = vsel %vm895_vm1, 4294967295, %v1330_v24  ;;  %v128_v39 = vmax.f32 %v822_v21, -100.0  ;;  %v154_v13 = vmul.f32 0.6931472, %v507_v18 }
  0x25   :  { %v1326_v36 = vsel %vm883_vm3, 4294967295, %v1325_v36  ;;  %vm889_vm2 = vcmp.eq.s32.totalorder %v1327_v62, 1  ;;  %v179_v25 = vmax.f32 %v150_v12, -100.0  ;;  %v193_v0 = vsub.f32 0.0, %v177_v49 }
  0x26   :  { %v1332_v42 = vunpack.c.3.s8 %v609_v11  ;;  %v156_v62 = vmul.f32 0.6931472, %v509_v35  ;;  %v180_v60 = vmax.f32 %v152_v51, -100.0  ;;  %v194_v56 = vsub.f32 0.0, %v178_v26 }
  0x27   :  { %v906_v52 = vsub.f32 0.0, %v126_v59  ;;  %v158_v48 = vmul.f32 0.6931472, %v511_v61  ;;  %v181_v44 = vmax.f32 %v154_v13, -100.0  ;;  %v195_v17 = vsub.f32 0.0, %v179_v25 }
  0x28   :  { %vm902_vm3 = vcmp.eq.s32.totalorder %v1332_v42, 1  ;;  %v209_v21 = vsel %vm770_vm6, %v193_v0, -1e+30  ;;  %v160_v12 = vmul.f32 0.6931472, %v513_v34  ;;  %v182_v49 = vmax.f32 %v156_v62, -100.0 }
  0x29   :  { %v196_v18 = vsub.f32 0.0, %v180_v60  ;;  %v210_v42 = vsel %vm778_vm7, %v194_v56, -1e+30  ;;  %225 = vst [vmem:[%s1244_s2] sm:$0xff] %v209_v21  ;;  %v183_v35 = vmax.f32 %v158_v48, -100.0  ;;  %v197_v59 = vsub.f32 0.0, %v181_v44 }
  0x2a   :  { %v211_v61 = vsel %vm794_vm9, %v195_v17, -1e+30  ;;  %226 = vst [vmem:[%s1244_s2 + $0x8] sm:$0xff] %v210_v42  ;;  %v262_v60 = vsel %vm764_vm5, %v784_v23, 0.0  ;;  %v184_v51 = vmax.f32 %v160_v12, -100.0  ;;  %v198_v26 = vsub.f32 0.0, %v182_v49 }
  0x2b   :  { %v212_v56 = vsel %vm818_vm12, %v196_v18, -1e+30  ;;  %227 = vst [vmem:[%s1244_s2 + $0x10] sm:$0xff] %v211_v61  ;;  %v928_v44 = vsub.f32 0.0, %v127_v1  ;;  %v199_v17 = vsub.f32 0.0, %v183_v35  ;;  %v935_v23 = vsub.f32 0.0, %v128_v39 }
  0x2c   :  { %v213_v48 = vsel %vm836_vm14, %v197_v59, -1e+30  ;;  %228 = vst [vmem:[%s1244_s2 + $0x18] sm:$0xff] %v212_v56  ;;  %v263_v13 = vsel %vm788_vm8, %v802_v5, 0.0  ;;  %v200_v25 = vsub.f32 0.0, %v184_v51  ;;  %v264_v1 = vsel %vm806_vm10, %v826_v63, 0.0 }
  0x2d   :  { %v214_v0 = vsel %vm852_vm4, %v198_v26, -1e+30  ;;  %229 = vst [vmem:[%s1244_s2 + $0x20] sm:$0xff] %v213_v48  ;;  %v265_v39 = vsel %vm812_vm11, %v840_v46, 0.0  ;;  %v215_v62 = vsel %vm874_vm15, %v199_v17, -1e+30  ;;  %vm1336_vm4 = vnez %v1282_v53 }
  0x2e   :  { %230 = vst [vmem:[%s1244_s2 + $0x28] sm:$0xff] %v214_v0  ;;  %v266_v5 = vsel %vm830_vm13, %v842_v16, 0.0  ;;  %v1335_v34 = vsel %vm660_vm0, %v716_v32, 0.0  ;;  %v1337_v63 = vsel %vm1336_vm4, %v726_v47, 0.0  ;;  %v216_v21 = vsel %vm895_vm1, %v200_v25, -1e+30 }
  0x2f   :  { %v273_v46 = vadd.f32 %v1337_v63, %v1335_v34  ;;  %231 = vst [vmem:[%s1244_s2 + $0x30] sm:$0xff] %v215_v62  ;;  %vm1338_vm11 = vnez %v1314_v22  ;;  %v530_v49 = vmov 0.0   ;;  %vm1339_vm13 = vnez %v1318_v37 }
  0x30   :  { %v267_v12 = vsel %vm1338_vm11, %v856_v20, 0.0  ;;  %v427_v32 = vsel %vm660_vm0, 1.0, %v530_v49  ;;  %v428_v47 = vsel %vm1336_vm4, 1.0, %v530_v49  ;;  %232 = vst [vmem:[%s1244_s2 + $0x38] sm:$0xff] %v216_v21  ;;  %v268_v18 = vsel %vm1339_vm13, %v858_v3, 0.0 }
  0x31   :  { %vm1340_vm11 = vnez %v1321_v31  ;;  %vm1341_vm1 = vnez %v1284_v54  ;;  %vm1343_vm0 = vnez %v1326_v36  ;;  %v271_v61 = vsel %vm889_vm2, %v928_v44, 0.0 }
  0x32   :  { %v269_v42 = vsel %vm1340_vm11, %v879_v38, 0.0  ;;  %v1342_v50 = vsel %vm1341_vm1, %v730_v27, 0.0  ;;  %v429_v53 = vsel %vm1341_vm1, 1.0, %v530_v49  ;;  %v270_v59 = vsel %vm1343_vm0, %v906_v52, 0.0 }
  0x33   :  { %v274_v35 = vadd.f32 %v273_v46, %v1342_v50  ;;  %v329_v51 = vadd.f32 %v428_v47, %v427_v32  ;;  %v443_v26 = vsel %vm770_vm6, 1.0, %v530_v49  ;;  %v272_v27 = vsel %vm902_vm3, %v935_v23, 0.0 }
  0x34   :  { %vm1344_vm4 = vnez %v1287_v57  ;;  %v444_v48 = vsel %vm778_vm7, 1.0, %v530_v49  ;;  %vm1346_vm1 = vnez %v1289_v58  ;;  %v445_v0 = vsel %vm794_vm9, 1.0, %v530_v49 }
  0x35   :  { %v1345_v54 = vsel %vm1344_vm4, %v734_v40, 0.0  ;;  %v430_v17 = vsel %vm1344_vm4, 1.0, %v530_v49  ;;  %v431_v14 = vsel %vm1346_vm1, 1.0, %v530_v49  ;;  %v330_v25 = vadd.f32 %v429_v53, %v329_v51 }
  0x36   :  { %v275_v56 = vadd.f32 %v274_v35, %v1345_v54  ;;  %v1347_v40 = vunpack.c.2.s8 %v589_v6  ;;  %v1350_v57 = vsel %vm1346_vm1, %v737_v55, 0.0  ;;  %v432_v34 = vsel %vm764_vm5, 1.0, %v530_v49 }
  0x37   :  { %v433_v19 = vsel %vm788_vm8, 1.0, %v530_v49  ;;  %v385_v63 = vadd.f32 %v444_v48, %v443_v26  ;;  %v434_v46 = vsel %vm806_vm10, 1.0, %v530_v49  ;;  %v331_v21 = vadd.f32 %v430_v17, %v330_v25 }
  0x38   :  { %vm1027_vm6 = vcmp.eq.s32.totalorder %v1347_v40, 0  ;;  %v276_v8 = vadd.f32 %v275_v56, %v1350_v57  ;;  %v446_v58 = vsel %vm818_vm12, 1.0, %v530_v49  ;;  %v447_v55 = vsel %vm836_vm14, 1.0, %v530_v49 }
  0x39   :  { %vm1351_vm5 = vnez %v1316_v30  ;;  %v449_v32 = vsel %vm874_vm15, 1.0, %v530_v49  ;;  %v386_v45 = vadd.f32 %v445_v0, %v385_v63  ;;  %v332_v47 = vadd.f32 %v431_v14, %v331_v21  ;;  %v1371_v0 = vld [vmem:[#allocation2_spill] sm:$0xff] }
  0x3a   :  { %v277_v2 = vadd.f32 %v276_v8, %v262_v60  ;;  %v448_v4 = vsel %vm1351_vm5, 1.0, %v530_v49  ;;  %vm1352_vm7 = vnez %v1331_v24  ;;  %v1353_v50 = vunpack.c.2.s8 %v594_v7 }
  0x3b   :  { %v450_v9 = vsel %vm1352_vm7, 1.0, %v530_v49  ;;  %v1356_v60 = vunpack.c.2.s8 %v604_v10  ;;  %v387_v35 = vadd.f32 %v446_v58, %v386_v45  ;;  %v1359_v53 = vunpack.c.2.s8 %v609_v11  ;;  %v1375_v58 = vld [vmem:[#allocation4_spill] sm:$0xff] }
  0x3c   :  { %vm1061_vm8 = vcmp.eq.s32.totalorder %v1353_v50, 0  ;;  %v278_v41 = vadd.f32 %v277_v2, %v263_v13  ;;  %v1362_v24 = vunpack.c.3.s8 %v589_v6  ;;  %v333_v54 = vadd.f32 %v432_v34, %v332_v47  ;;  %v1373_v34 = vld [vmem:[#allocation3_spill] sm:$0xff]  ;;  %v1378_v50 = vld [vmem:[#allocation5_spill] sm:$0xff] }
  0x3d   :  { %vm1067_vm9 = vcmp.eq.s32.totalorder %v1356_v60, 0  ;;  %vm1073_vm10 = vcmp.eq.s32.totalorder %v1359_v53, 0  ;;  %v1365_v56 = vunpack.c.3.s8 %v594_v7  ;;  %v1368_v13 = vunpack.c.3.s8 %v604_v10  ;;  %v1381_v60 = vld [vmem:[#allocation6_spill] sm:$0xff]  ;;  %v1383_v53 = vld [vmem:[#allocation7_spill] sm:$0xff] }
  0x3e   :  { %vm1079_vm12 = vcmp.eq.s32.totalorder %v1362_v24, 0  ;;  %v451_v6 = vsel %vm1027_vm6, 1.0, %v530_v49  ;;  %v279_v14 = vadd.f32 %v278_v41, %v264_v1  ;;  %v388_v25 = vadd.f32 %v447_v55, %v387_v35 }
  0x3f   :  { %vm1085_vm14 = vcmp.eq.s32.totalorder %v1365_v56, 0  ;;  %vm1091_vm15 = vcmp.eq.s32.totalorder %v1368_v13, 0  ;;  %v452_v7 = vsel %vm1061_vm8, 1.0, %v530_v49  ;;  %v1372_v40 = vsub.f32 1.0, %v1371_v0  ;;  %v1386_v56 = vld [vmem:[#allocation8_spill] sm:$0xff] }
  0x40   :  { %v334_v57 = vadd.f32 %v433_v19, %v333_v54  ;;  %v453_v10 = vsel %vm1067_vm9, 1.0, %v530_v49  ;;  %v454_v8 = vsel %vm1073_vm10, 1.0, %v530_v49  ;;  %v1374_v63 = vsub.f32 1.0, %v1373_v34 }
  0x41   :  { %514 = vlog2.f32 %v1372_v40  ;;  %v280_v1 = vadd.f32 %v279_v14, %v265_v39  ;;  %v389_v21 = vadd.f32 %v448_v4, %v388_v25  ;;  %v1376_v55 = vsub.f32 1.0, %v1375_v58  ;;  %v1388_v40 = vld [vmem:[#allocation9_spill] sm:$0xff] }
  0x42   :  { %516 = vlog2.f32 %v1374_v63  ;;  %vm1377_vm4 = vnez %v1306_v28  ;;  %v335_v2 = vadd.f32 %v434_v46, %v334_v57  ;;  %v455_v45 = vsel %vm1079_vm12, 1.0, %v530_v49 }
  0x43   :  { %518 = vlog2.f32 %v1376_v55  ;;  %v435_v19 = vsel %vm1377_vm4, 1.0, %v530_v49  ;;  %v1122_v47 = vsel %vm1085_vm14, 1.0, %v530_v49  ;;  %v1379_v39 = vsub.f32 1.0, %v1378_v50 }
  0x44   :  { %vm1380_vm1 = vnez %v1310_v43  ;;  %v281_v4 = vadd.f32 %v280_v1, %v266_v5  ;;  %v390_v28 = vadd.f32 %v449_v32, %v389_v21  ;;  %v1382_v46 = vsub.f32 1.0, %v1381_v60 }
  0x45   :  { %520 = vlog2.f32 %v1379_v39  ;;  %v436_v41 = vsel %vm1380_vm1, 1.0, %v530_v49  ;;  %v1138_v35 = vsel %vm1091_vm15, 1.0, %v530_v49  ;;  %v1384_v24 = vsub.f32 1.0, %v1383_v53 }
  0x46   :  { %522 = vlog2.f32 %v1382_v46  ;;  %vm1385_vm5 = vnez %v1314_v22  ;;  %v336_v5 = vadd.f32 %v435_v19, %v335_v2  ;;  %v282_v43 = vadd.f32 %v281_v4, %v267_v12 }
  0x47   :  { %524 = vlog2.f32 %v1384_v24  ;;  %v437_v16 = vsel %vm1385_vm5, 1.0, %v530_v49  ;;  %v515_v32 = vpop.eup %514  ;;  %v391_v54 = vadd.f32 %v450_v9, %v390_v28  ;;  %v1387_v13 = vsub.f32 1.0, %v1386_v56 }
  0x48   :  { %v438_v14 = vsel %vm1339_vm13, 1.0, %v530_v49  ;;  %v517_v25 = vpop.eup %516  ;;  %v162_v0 = vmul.f32 0.6931472, %v515_v32  ;;  %v1389_v57 = vsub.f32 1.0, %v1388_v40  ;;  %v439_v22 = vsel %vm1340_vm11, 1.0, %v530_v49 }
  0x49   :  { %526 = vlog2.f32 %v1387_v13  ;;  %v337_v34 = vadd.f32 %v436_v41, %v336_v5  ;;  %v519_v20 = vpop.eup %518  ;;  %v283_v12 = vadd.f32 %v282_v43, %v268_v18  ;;  %v1390_v9 = vunpack.c.3.s8 %v609_v11 }
  0x4a   :  { %528 = vlog2.f32 %v1389_v57  ;;  %v392_v1 = vadd.f32 %v451_v6, %v391_v54  ;;  %v164_v21 = vmul.f32 0.6931472, %v517_v25  ;;  %v440_v58 = vsel %vm1343_vm0, 1.0, %v530_v49 }
  0x4b   :  { %vm1165_vm7 = vcmp.eq.s32.totalorder %v1390_v9, 0  ;;  %v521_v55 = vpop.eup %520  ;;  %v166_v19 = vmul.f32 0.6931472, %v519_v20  ;;  %v185_v2 = vmax.f32 %v162_v0, -100.0  ;;  %v441_v37 = vsel %vm889_vm2, 1.0, %v530_v49 }
  0x4c   :  { %v338_v3 = vadd.f32 %v437_v16, %v337_v34  ;;  %v523_v18 = vpop.eup %522  ;;  %v284_v11 = vadd.f32 %v283_v12, %v269_v42  ;;  %v393_v6 = vadd.f32 %v452_v7, %v392_v1  ;;  %v168_v50 = vmul.f32 0.6931472, %v521_v55 }
  0x4d   :  { %v186_v39 = vmax.f32 %v164_v21, -100.0  ;;  %v525_v4 = vpop.eup %524  ;;  %v170_v28 = vmul.f32 0.6931472, %v523_v18  ;;  %v187_v60 = vmax.f32 %v166_v19, -100.0  ;;  %v201_v46 = vsub.f32 0.0, %v185_v2 }
  0x4e   :  { %v339_v41 = vadd.f32 %v438_v14, %v338_v3  ;;  %v285_v24 = vadd.f32 %v284_v11, %v270_v59  ;;  %v394_v16 = vadd.f32 %v453_v10, %v393_v6  ;;  %v172_v5 = vmul.f32 0.6931472, %v525_v4 }
  0x4f   :  { %v527_v53 = vpop.eup %526  ;;  %v188_v31 = vmax.f32 %v168_v50, -100.0  ;;  %v189_v42 = vmax.f32 %v170_v28, -100.0  ;;  %v202_v7 = vsub.f32 0.0, %v186_v39  ;;  %v203_v43 = vsub.f32 0.0, %v187_v60 }
  0x50   :  { %v529_v32 = vpop.eup %528  ;;  %v174_v38 = vmul.f32 0.6931472, %v527_v53  ;;  %v286_v54 = vadd.f32 %v285_v24, %v271_v61  ;;  %v395_v56 = vadd.f32 %v454_v8, %v394_v16  ;;  %v190_v14 = vmax.f32 %v172_v5, -100.0 }
  0x51   :  { %v176_v13 = vmul.f32 0.6931472, %v529_v32  ;;  %v204_v25 = vsub.f32 0.0, %v188_v31  ;;  %v205_v52 = vsub.f32 0.0, %v189_v42  ;;  %v217_v59 = vsel %vm1027_vm6, %v201_v46, -1e+30 }
  0x52   :  { %v191_v36 = vmax.f32 %v174_v38, -100.0  ;;  %v287_v10 = vadd.f32 %v286_v54, %v272_v27  ;;  %v396_v0 = vadd.f32 %v455_v45, %v395_v56  ;;  %v206_v33 = vsub.f32 0.0, %v190_v14  ;;  %233 = vst [vmem:[%s1244_s2 + $0x40] sm:$0xff] %v217_v59 }
  0x53   :  { %v192_v40 = vmax.f32 %v176_v13, -100.0  ;;  %v218_v61 = vsel %vm1061_vm8, %v202_v7, -1e+30  ;;  %v219_v62 = vsel %vm1067_vm9, %v203_v43, -1e+30  ;;  %v340_v8 = vadd.f32 %v439_v22, %v339_v41 }
  0x54   :  { %v207_v44 = vsub.f32 0.0, %v191_v36  ;;  %288 = vadd.xlane.f32.xlu0 %v287_v10  ;;  %v397_v57 = vadd.f32 %v1122_v47, %v396_v0  ;;  %v220_v27 = vsel %vm1073_vm10, %v204_v25, -1e+30  ;;  %v221_v45 = vsel %vm1079_vm12, %v205_v52, -1e+30  ;;  %234 = vst [vmem:[%s1244_s2 + $0x48] sm:$0xff] %v218_v61 }
  0x55   :  { %v208_v23 = vsub.f32 0.0, %v192_v40  ;;  %v458_v29 = vsel %vm1165_vm7, 1.0, %v530_v49  ;;  %v222_v30 = vsel %vm1085_vm14, %v206_v33, -1e+30  ;;  %235 = vst [vmem:[%s1244_s2 + $0x50] sm:$0xff] %v219_v62  ;;  %v341_v51 = vadd.f32 %v440_v58, %v340_v8 }
  0x56   :  { %v398_v47 = vadd.f32 %v1138_v35, %v397_v57  ;;  %v223_v26 = vsel %vm1091_vm15, %v207_v44, -1e+30  ;;  %236 = vst [vmem:[%s1244_s2 + $0x58] sm:$0xff] %v220_v27  ;;  %v442_v22 = vsel %vm902_vm3, 1.0, %v530_v49  ;;  %v409_v60 = vlaneseq }
  0x57   :  { %v224_v17 = vsel %vm1165_vm7, %v208_v23, -1e+30  ;;  %237 = vst [vmem:[%s1244_s2 + $0x60] sm:$0xff] %v221_v45  ;;  %v342_v34 = vadd.f32 %v441_v37, %v341_v51 }
  0x58   :  { %v399_v35 = vadd.f32 %v458_v29, %v398_v47  ;;  %238 = vst [vmem:[%s1244_s2 + $0x68] sm:$0xff] %v222_v30  ;;  %v410_v46 = vshrl.u32 %v409_v60, 7 }
  0x59   :  { %239 = vst [vmem:[%s1244_s2 + $0x70] sm:$0xff] %v223_v26  ;;  %v343_v48 = vadd.f32 %v442_v22, %v342_v34 }
  0x5a   :  { %400 = vadd.xlane.f32.xlu1 %v399_v35  ;;  %240 = vst [vmem:[%s1244_s2 + $0x78] sm:$0xff] %v224_v17  ;;  %vm412_vm2 = vcmp.eq.s32.totalorder %v410_v46, 1  ;;  %vm411_vm3 = vcmp.eq.s32.totalorder %v410_v46, 0 }
  0x5c   :  { %344 = vadd.xlane.f32.xlu0 %v343_v48 }
  0xc7   :  { %v289_v15 = vpop.xlane.xlu0 %288 }
  0xc8   :  { %v290_v49 = vrot.slane %v289_v15, 4 }
  0xca   :  { %v291_v20 = vadd.f32 %v290_v49, %v289_v15 }
  0xcc   :  { %v292_v12 = vrot.slane %v291_v20, 2 }
  0xcd   :  { %v401_v9 = vpop.xlane.xlu1 %400 }
  0xce   :  { %v402_v63 = vrot.slane %v401_v9, 4  ;;  %v293_v1 = vadd.f32 %v292_v12, %v291_v20 }
  0xcf   :  { %v345_v21 = vpop.xlane.xlu0 %344 }
  0xd0   :  { %v403_v58 = vadd.f32 %v402_v63, %v401_v9  ;;  %v346_v55 = vrot.slane %v345_v21, 4  ;;  %v294_v19 = vrot.slane %v293_v1, 1 }
  0xd2   :  { %v404_v2 = vrot.slane %v403_v58, 2  ;;  %v347_v37 = vadd.f32 %v346_v55, %v345_v21  ;;  %v295_v3 = vadd.f32 %v294_v19, %v293_v1 }
  0xd4   :  { %v405_v18 = vadd.f32 %v404_v2, %v403_v58  ;;  %v348_v11 = vrot.slane %v347_v37, 2  ;;  %459 = vpush %v295_v3 }
  0xd6   :  { %v349_v6 = vadd.f32 %v348_v11, %v347_v37  ;;  %v406_v50 = vrot.slane %v405_v18, 1 }
  0xd8   :  { %v350_v39 = vrot.slane %v349_v6, 1  ;;  %v407_v28 = vadd.f32 %v406_v50, %v405_v18 }
  0xda   :  { %v351_v4 = vadd.f32 %v350_v39, %v349_v6 }
  0xdc   :  { %461 = vpush %v351_v4 }
  0xdd   :  { %463 = vpush %v407_v28 }
 0x105   :  { %s460_s2 = spop %459 }
 0x106   :  { %v416_v24 = vstv %s460_s2 }
 0x10d   :  { %s462_s26 = spop %461 }
 0x10e   :  { %v413_v41 = vstv %s462_s26  ;;  %s464_s27 = spop %463 }
 0x10f   :  { %v414_v53 = vstv %s464_s27 }
 0x110   :  { %v415_v16 = vsel %vm412_vm2, %v413_v41, %v414_v53 }
 0x111   :  { %v417_v5 = vsel %vm411_vm3, %v416_v24, %v415_v16 }
 0x112   :  { %418 = vst [vmem:[%s1245_s3] sm:$0x7] %v417_v5 }

</bundles_post_ra>
